<compile_context>
chip_gen: v5e
topology: v5e:2x2
jax: 0.10.0
libtpu: 0.0.40
codegen_flags: <defaults>
</compile_context>

<pallas_src>
import jax
import jax.experimental
import jax.numpy as jnp
import numpy as np
from jax.experimental import pallas as pl
from jax.experimental.pallas import tpu as pltpu

IN_DIM = 12
HIDDEN = 100
OUT_DIM = 4
MAX_TILE_B = 1024  # multiple of 8; amortizes ~0.35 us/grid-step overhead at large B


def _round_up(n, m):
    return ((n + m - 1) // m) * m


def qnet_kernel(x_ref, w1_ref, b1_ref, w2_ref, b2_ref, o_ref):
    # Hidden layer: (TB,12) @ (12,100) + (1,100), ReLU. MXU is tiny by shape
    # (K=12, N=100 pad to one 128-wide pass) -- this kernel is HBM-bound on x.
    h = jnp.dot(x_ref[...], w1_ref[...], preferred_element_type=jnp.float32)
    h = jnp.maximum(h + b1_ref[...], 0.0)
    # Output layer: (TB,100) @ (100,4) + (1,4).
    o_ref[...] = (
        jnp.dot(h, w2_ref[...], preferred_element_type=jnp.float32) + b2_ref[...]
    )


@jax.jit
def _qnet_forward_f32(x, w1, b1, w2, b2):
    B = x.shape[0]
    tile_b = min(MAX_TILE_B, _round_up(B, 8))
    b_pad = _round_up(B, tile_b)
    if b_pad != B:
        # Pad the tail tile; padded rows are sliced off below.
        x = jnp.pad(x, ((0, b_pad - B), (0, 0)))
    grid = (b_pad // tile_b,)

    flops = 2 * b_pad * (IN_DIM * HIDDEN + HIDDEN * OUT_DIM)
    bytes_accessed = (
        b_pad * IN_DIM * 4
        + b_pad * OUT_DIM * 4
        + (IN_DIM * HIDDEN + HIDDEN + HIDDEN * OUT_DIM + OUT_DIM) * 4
    )

    out = pl.pallas_call(
        qnet_kernel,
        out_shape=jax.ShapeDtypeStruct((b_pad, OUT_DIM), jnp.float32),
        grid=grid,
        in_specs=[
            # Batch-tiled activation block.
            pl.BlockSpec((tile_b, IN_DIM), lambda i: (i, 0)),
            # Weights/biases: constant index_map -> resident in VMEM.
            pl.BlockSpec((IN_DIM, HIDDEN), lambda i: (0, 0)),
            pl.BlockSpec((1, HIDDEN), lambda i: (0, 0)),
            pl.BlockSpec((HIDDEN, OUT_DIM), lambda i: (0, 0)),
            pl.BlockSpec((1, OUT_DIM), lambda i: (0, 0)),
        ],
        out_specs=pl.BlockSpec((tile_b, OUT_DIM), lambda i: (i, 0)),
        compiler_params=pltpu.CompilerParams(
            dimension_semantics=("parallel",),      # 2 TCs on v7x
            vmem_limit_bytes=32 * 1024 * 1024,      # explicit, portable limit
        ),
        cost_estimate=pl.CostEstimate(
            flops=flops, transcendentals=0, bytes_accessed=bytes_accessed
        ),
    )(x, w1, b1, w2, b2)
    return out[:B]


def _cast_to_f64(x_f32):
    """Local .double(): enable x64 only around this cast so the rest of the
    program (kernel, RNG, literal promotion) stays f32."""
    try:
        ctx = jax.experimental.enable_x64()
    except AttributeError:  # very old/new jax without the context manager
        jax.config.update("jax_enable_x64", True)
        return x_f32.astype(jnp.float64)
    with ctx:
        return x_f32.astype(jnp.float64)


def qnet_forward(x, w1, b1, w2, b2):
    """Full QNet forward pass.

    x : (B, 12) float32
    returns (B, 4) float64 (matching torch's .double(); compute is f32 like torch)
    """
    out_f32 = _qnet_forward_f32(x, w1, b1, w2, b2)
    # TODO(synk): no native f64 datapath on TPU MXU -- f64 is a post-kernel cast.
    return _cast_to_f64(out_f32)


def init_params(key):
    """Deterministic init mimicking torch.nn.Linear defaults U(-1/sqrt(fan_in), +)."""
    k1, k2, k3, k4 = jax.random.split(key, 4)
    bound1 = 1.0 / jnp.sqrt(12.0)
    bound2 = 1.0 / jnp.sqrt(100.0)
    w1 = jax.random.uniform(k1, (IN_DIM, HIDDEN), jnp.float32, -bound1, bound1)
    b1 = jax.random.uniform(k2, (1, HIDDEN), jnp.float32, -bound1, bound1)
    w2 = jax.random.uniform(k3, (HIDDEN, OUT_DIM), jnp.float32, -bound2, bound2)
    b2 = jax.random.uniform(k4, (1, OUT_DIM), jnp.float32, -bound2, bound2)
    return w1, b1, w2, b2


if __name__ == "__main__":
    key = jax.random.PRNGKey(0)
    pkey, xkey1, xkey2 = jax.random.split(key, 3)
    w1, b1, w2, b2 = init_params(pkey)

    ok = True
    # Test a tile-aligned batch and a ragged batch (exercises the padding path).
    for B in (8, 13):
        xk = xkey1 if B == 8 else xkey2
        x = jax.random.normal(xk, (B, IN_DIM), jnp.float32)

        out = qnet_forward(x, w1, b1, w2, b2)
        jax.block_until_ready(out)

        # Reference in plain JAX (f32 compute, like torch, then compare as f64).
        ref = jnp.maximum(x @ w1 + b1, 0.0) @ w2 + b2
        ok &= out.shape == (B, OUT_DIM)
        ok &= out.dtype == jnp.float64
        ok &= bool(
            np.allclose(
                np.asarray(out, dtype=np.float64),
                np.asarray(ref, dtype=np.float64),
                atol=1e-5,
                rtol=1e-5,
            )
        )

    assert ok
    print("KERNEL_OK")
</pallas_src>

<mosaic_0001>
module attributes {stable_mosaic.version = 11 : i64} {
  func.func @qnet_kernel(%arg0: i32, %arg1: memref<8x12xf32, #tpu.memory_space<vmem>>, %arg2: memref<12x100xf32, #tpu.memory_space<vmem>>, %arg3: memref<1x100xf32, #tpu.memory_space<vmem>>, %arg4: memref<100x4xf32, #tpu.memory_space<vmem>>, %arg5: memref<1x4xf32, #tpu.memory_space<vmem>>, %arg6: memref<8x4xf32, #tpu.memory_space<vmem>>) attributes {dimension_semantics = [#tpu.dimension_semantics<parallel>], iteration_bounds = array<i64: 1>, scalar_prefetch = 0 : i64, scratch_operands = 0 : i64, tpu.core_type = #tpu.core_type<tc>, window_params = [{transform_indices = @transform_0, window_bounds = array<i64: 8, 12>}, {pipeline_mode = #tpu.pipeline_mode<synchronous>, transform_indices = @transform_1, window_bounds = array<i64: 12, 100>}, {pipeline_mode = #tpu.pipeline_mode<synchronous>, transform_indices = @transform_2, window_bounds = array<i64: 1, 100>}, {pipeline_mode = #tpu.pipeline_mode<synchronous>, transform_indices = @transform_3, window_bounds = array<i64: 100, 4>}, {pipeline_mode = #tpu.pipeline_mode<synchronous>, transform_indices = @transform_4, window_bounds = array<i64: 1, 4>}, {transform_indices = @transform_5, window_bounds = array<i64: 8, 4>}]} {
    %c0 = arith.constant 0 : index
    %c0_0 = arith.constant 0 : index
    %0 = vector.load %arg1[%c0, %c0_0] : memref<8x12xf32, #tpu.memory_space<vmem>>, vector<8x12xf32>
    %c0_1 = arith.constant 0 : index
    %c0_2 = arith.constant 0 : index
    %1 = vector.load %arg2[%c0_1, %c0_2] : memref<12x100xf32, #tpu.memory_space<vmem>>, vector<12x100xf32>
    %cst = arith.constant dense<0.000000e+00> : vector<8x100xf32>
    %2 = tpu.matmul %0, %1, %cst {dimension_numbers = #tpu.dot_dimension_numbers<[1], [0], [0], [1], [0, 0, 1, 1], [], []>} : vector<8x12xf32>, vector<12x100xf32>, vector<8x100xf32> -> vector<8x100xf32>
    %c0_3 = arith.constant 0 : index
    %c0_4 = arith.constant 0 : index
    %3 = vector.load %arg3[%c0_3, %c0_4] : memref<1x100xf32, #tpu.memory_space<vmem>>, vector<1x100xf32>
    %4 = vector.broadcast %3 : vector<1x100xf32> to vector<8x100xf32>
    %5 = arith.addf %2, %4 : vector<8x100xf32>
    %cst_5 = arith.constant 0.000000e+00 : f32
    %6 = vector.broadcast %cst_5 : f32 to vector<8x100xf32>
    %7 = arith.maximumf %5, %6 : vector<8x100xf32>
    %c0_6 = arith.constant 0 : index
    %c0_7 = arith.constant 0 : index
    %8 = vector.load %arg4[%c0_6, %c0_7] : memref<100x4xf32, #tpu.memory_space<vmem>>, vector<100x4xf32>
    %cst_8 = arith.constant dense<0.000000e+00> : vector<8x4xf32>
    %9 = tpu.matmul %7, %8, %cst_8 {dimension_numbers = #tpu.dot_dimension_numbers<[1], [0], [0], [1], [0, 0, 1, 1], [], []>} : vector<8x100xf32>, vector<100x4xf32>, vector<8x4xf32> -> vector<8x4xf32>
    %c0_9 = arith.constant 0 : index
    %c0_10 = arith.constant 0 : index
    %10 = vector.load %arg5[%c0_9, %c0_10] : memref<1x4xf32, #tpu.memory_space<vmem>>, vector<1x4xf32>
    %11 = vector.broadcast %10 : vector<1x4xf32> to vector<8x4xf32>
    %12 = arith.addf %9, %11 : vector<8x4xf32>
    %c0_11 = arith.constant 0 : index
    %c0_12 = arith.constant 0 : index
    %13 = vector.load %arg6[%c0_11, %c0_12] : memref<8x4xf32, #tpu.memory_space<vmem>>, vector<8x4xf32>
    tpu.vector_store %arg6[%c0_11, %c0_12], %12 {strides = array<i32>} : memref<8x4xf32, #tpu.memory_space<vmem>>, vector<8x4xf32>,
    return
  }
  func.func @transform_0(%arg0: i32) -> (i32, i32) {
    %c0_i32 = arith.constant 0 : i32
    %c0_i32_0 = arith.constant 0 : i32
    return %arg0, %c0_i32 : i32, i32
  }
  func.func @transform_1(%arg0: i32) -> (i32, i32) {
    %c0_i32 = arith.constant 0 : i32
    %c0_i32_0 = arith.constant 0 : i32
    %c0_i32_1 = arith.constant 0 : i32
    return %c0_i32, %c0_i32_0 : i32, i32
  }
  func.func @transform_2(%arg0: i32) -> (i32, i32) {
    %c0_i32 = arith.constant 0 : i32
    %c0_i32_0 = arith.constant 0 : i32
    %c0_i32_1 = arith.constant 0 : i32
    return %c0_i32, %c0_i32_0 : i32, i32
  }
  func.func @transform_3(%arg0: i32) -> (i32, i32) {
    %c0_i32 = arith.constant 0 : i32
    %c0_i32_0 = arith.constant 0 : i32
    %c0_i32_1 = arith.constant 0 : i32
    return %c0_i32, %c0_i32_0 : i32, i32
  }
  func.func @transform_4(%arg0: i32) -> (i32, i32) {
    %c0_i32 = arith.constant 0 : i32
    %c0_i32_0 = arith.constant 0 : i32
    %c0_i32_1 = arith.constant 0 : i32
    return %c0_i32, %c0_i32_0 : i32, i32
  }
  func.func @transform_5(%arg0: i32) -> (i32, i32) {
    %c0_i32 = arith.constant 0 : i32
    %c0_i32_0 = arith.constant 0 : i32
    return %arg0, %c0_i32 : i32, i32
  }
}

</mosaic_0001>

<bundles_post_ra>
// kernel: _qnet_forward_f32.1
= control target key start
LH: loop header
LB: loop body
LE: loop exit
PB: predicated region body
PF: predicated region fallthrough
CT: control target
= control target key end

     0   :  { %vm31_vm0 = vcmask 1043456   ;;  %vm27_vm1 = vcmask 97280   ;;  %vm73_vm2 = vcmask 818176   ;;  %vm100_vm3 = vcmask 31744   ;;  %s199_s1 = inlined_call_operand.vmem [shape: f32[12,100], index: 1, kind: input, shape index: {}]   ;;  %s200_s0 = inlined_call_operand.vmem [shape: f32[8,12], index: 0, kind: input, shape index: {}]   ;;  %s201_s3 = inlined_call_operand.vmem [shape: f32[100,4], index: 3, kind: input, shape index: {}]   ;;  %s202_s2 = inlined_call_operand.vmem [shape: f32[1,100], index: 2, kind: input, shape index: {}]   ;;  %s203_s4 = inlined_call_operand.vmem [shape: f32[1,4], index: 4, kind: input, shape index: {}]   ;;  %s204_s5 = inlined_call_operand.vmem [shape: f32[8,4], index: 5, kind: output, shape index: {}]  }
   0x1   :  { %v22_v0 = vld [vmem:[%s199_s1 + $0x8] sm:$0xf]  ;;  %v21_v1 = vld [vmem:[%s199_s1] sm:$0xff]  ;;  %v67_v4 = vld [vmem:[%s201_s3 + $0x58] sm:$0xff] }
   0x2   :  { %106 = vmatpush.msk.msra.mxu0 %vm31_vm0, %v22_v0  ;;  %v20_v2 = vld [vmem:[%s200_s0] sm:$0xff]  ;;  %v66_v5 = vld [vmem:[%s201_s3 + $0x50] sm:$0xff]  ;;  %v65_v6 = vld [vmem:[%s201_s3 + $0x48] sm:$0xff] }
   0x3   :  { %v68_v3 = vld [vmem:[%s201_s3 + $0x60] sm:$0xf]  ;;  %v63_v8 = vld [vmem:[%s201_s3 + $0x38] sm:$0xff]  ;;  %v62_v9 = vld [vmem:[%s201_s3 + $0x30] sm:$0xff] }
   0x4   :  { %108 = vmatpush.msk.msra.mxu1 %vm31_vm0, %v68_v3  ;;  %50 = vmatpush.msra.mxu0 %v21_v1  ;;  %v64_v7 = vld [vmem:[%s201_s3 + $0x40] sm:$0xff]  ;;  %v61_v10 = vld [vmem:[%s201_s3 + $0x28] sm:$0xff]  ;;  %v59_v12 = vld [vmem:[%s201_s3 + $0x18] sm:$0xff] }
   0x5   :  { %107 = vmatmul.msk.f32.vlgmr.msra.gmra.mxu0 %vm27_vm1, %v20_v2  ;;  %v60_v11 = vld [vmem:[%s201_s3 + $0x20] sm:$0xff]  ;;  %v58_v13 = vld [vmem:[%s201_s3 + $0x10] sm:$0xff]  ;;  %v57_v14 = vld [vmem:[%s201_s3 + $0x8] sm:$0xff] }
   0x6   :  { %84 = vmatpush.msra.mxu1 %v67_v4  ;;  %v56_v15 = vld [vmem:[%s201_s3] sm:$0xff] }
   0x7   :  { %v110_v16 = vld [vmem:[%s202_s2] ss:$0 sm:$0xff] }
   0x8   :  { %85 = vmatpush.msra.mxu1 %v66_v5  ;;  %v111_v20 = vld [vmem:[%s203_s4] ss:$0 sm:$0xff] }
   0xa   :  { %86 = vmatpush.msra.mxu1 %v65_v6 }
   0xc   :  { %87 = vmatpush.msra.mxu1 %v64_v7 }
   0xe   :  { %88 = vmatpush.msra.mxu1 %v63_v8 }
  0x10   :  { %89 = vmatpush.msra.mxu1 %v62_v9 }
  0x12   :  { %90 = vmatpush.msra.mxu1 %v61_v10 }
  0x14   :  { %91 = vmatpush.msra.mxu1 %v60_v11 }
  0x16   :  { %92 = vmatpush.msra.mxu1 %v59_v12 }
  0x18   :  { %93 = vmatpush.msra.mxu1 %v58_v13 }
  0x1a   :  { %94 = vmatpush.msra.mxu1 %v57_v14 }
  0x1c   :  { %95 = vmatpush.msra.mxu1 %v56_v15 }
  0x82   :  { %v52_v17 = vpop.f32.mrf.mxu0 }
  0x83   :  { %v53_v18 = vadd.f32 %v110_v16, %v52_v17 }
  0x85   :  { %v55_v19 = vmax.f32 %v53_v18, 0.0 }
  0x87   :  { %109 = vmatmul.msk.f32.vlgmr.msra.gmra.mxu1 %vm73_vm2, %v55_v19 }
 0x104   :  { %v97_v21 = vpop.f32.mrf.mxu1 }
 0x105   :  { %v98_v22 = vadd.f32 %v111_v20, %v97_v21 }
 0x107   :  { %101 = vst.msk [vmem:[%s204_s5] sm:$0xff] %vm100_vm3, %v98_v22 }

</bundles_post_ra>
